<compile_context>
chip_gen: v6e
topology: v6e:2x2x1
jax: 0.10.0
libtpu: 0.0.40
codegen_flags: <defaults>
</compile_context>

<pallas_src>
import math
from functools import partial

import jax
import jax.numpy as jnp
from jax.experimental import pallas as pl
from jax.experimental.pallas import tpu as pltpu

LANE = 128
SUBLANE = 8


def _round_up(n, m):
    return ((n + m - 1) // m) * m


# --------------------------------------------------------------------------
# Kernel: one (tm, in_dim) activation tile through the fused 3-layer MLP.
# Weights / packed biases use constant index_maps, so Pallas keeps them
# VMEM-resident across grid steps; only x / out tiles are pipelined.
# --------------------------------------------------------------------------
def mlp_kernel(x_ref, w1_ref, w2_ref, w3_ref, b_ref, o_ref, *, compute_dtype):
    h1_p = w1_ref.shape[1]
    h2_p = w2_ref.shape[1]
    out_dim = w3_ref.shape[1]

    # Layer 1: Linear + ReLU   (MXU matmul, f32 accumulation, f32 epilogue)
    h1 = jnp.dot(x_ref[...], w1_ref[...], preferred_element_type=jnp.float32)
    h1 = jnp.maximum(h1 + b_ref[0:1, 0:h1_p], 0.0)

    # Layer 2: Linear + ReLU
    h2 = jnp.dot(h1.astype(compute_dtype), w2_ref[...],
                 preferred_element_type=jnp.float32)
    h2 = jnp.maximum(h2 + b_ref[1:2, 0:h2_p], 0.0)

    # Output layer: Linear + Sigmoid (store unpadded out_dim lanes)
    logits = jnp.dot(h2.astype(compute_dtype), w3_ref[...],
                     preferred_element_type=jnp.float32)
    logits = logits + b_ref[2:3, 0:out_dim]
    o_ref[...] = jax.nn.sigmoid(logits).astype(o_ref.dtype)


# --------------------------------------------------------------------------
# One-time parameter preparation (hoisted out of the per-call forward):
# pad hidden dims to 128 lanes (exact: zero rows/cols contribute nothing),
# keep in_dim / out_dim unpadded, pack the three biases into one (8, L) f32
# operand (single small DMA instead of three).
# --------------------------------------------------------------------------
def prepare_params(w1, b1, w2, b2, w3, b3, *, compute_dtype=jnp.bfloat16):
    in_dim, h1_dim = w1.shape
    h2_dim = w2.shape[1]
    out_dim = w3.shape[1]

    h1_p = _round_up(h1_dim, LANE)
    h2_p = _round_up(h2_dim, LANE)

    w1p = jnp.pad(w1, ((0, 0), (0, h1_p - h1_dim))).astype(compute_dtype)
    w2p = jnp.pad(w2, ((0, h1_p - h1_dim), (0, h2_p - h2_dim))).astype(compute_dtype)
    w3p = jnp.pad(w3, ((0, h2_p - h2_dim), (0, 0))).astype(compute_dtype)

    bias_lanes = max(h1_p, h2_p, out_dim)
    bp = jnp.zeros((SUBLANE, bias_lanes), jnp.float32)
    bp = bp.at[0, :h1_dim].set(b1.reshape(-1).astype(jnp.float32))
    bp = bp.at[1, :h2_dim].set(b2.reshape(-1).astype(jnp.float32))
    bp = bp.at[2, :out_dim].set(b3.reshape(-1).astype(jnp.float32))

    return {"w1": w1p, "w2": w2p, "w3": w3p, "bias": bp,
            "compute_dtype": compute_dtype}


# --------------------------------------------------------------------------
# Fused forward via Pallas.
# --------------------------------------------------------------------------
def mlp_forward_pallas(params, x, *, block_batch=1024, out_dtype=jnp.float32):
    w1p, w2p, w3p, bp = params["w1"], params["w2"], params["w3"], params["bias"]
    compute_dtype = params["compute_dtype"]

    batch, in_dim = x.shape
    assert in_dim == w1p.shape[0], "x feature dim mismatch"
    h1_p = w1p.shape[1]
    h2_p = w2p.shape[1]
    out_dim = w3p.shape[1]
    bias_lanes = bp.shape[1]

    # --- batch tiling: minimal padding, >=2 blocks when possible (v7x TCs) ---
    n_blocks = pl.cdiv(batch, block_batch)
    if batch >= 2 * SUBLANE:
        n_blocks = max(n_blocks, 2)
    tm = _round_up(pl.cdiv(batch, n_blocks), SUBLANE)
    batch_p = n_blocks * tm

    xp = x.astype(compute_dtype)
    if batch_p != batch:
        xp = jnp.pad(xp, ((0, batch_p - batch), (0, 0)))

    # --- explicit VMEM budget: 2x double-buffered x/out tiles + resident
    #     weights + f32 intermediates + headroom; >= 32 MiB (covers v5e's
    #     16 MiB default), capped at v7x's 64 MiB physical per-TC budget. ---
    c_bytes = jnp.dtype(compute_dtype).itemsize
    o_bytes = jnp.dtype(out_dtype).itemsize
    vmem_needed = (2 * tm * (in_dim * c_bytes + out_dim * o_bytes)
                   + 2 * ((in_dim * h1_p + h1_p * h2_p + h2_p * out_dim) * c_bytes
                          + SUBLANE * bias_lanes * 4)
                   + 2 * tm * max(h1_p, h2_p) * 4
                   + (8 << 20))
    vmem_limit = int(min(max(vmem_needed, 32 << 20), 64 << 20))

    out_padded = pl.pallas_call(
        partial(mlp_kernel, compute_dtype=compute_dtype),
        out_shape=jax.ShapeDtypeStruct((batch_p, out_dim), out_dtype),
        grid=(n_blocks,),
        in_specs=[
            pl.BlockSpec((tm, in_dim), lambda i: (i, 0)),          # x (pipelined)
            pl.BlockSpec((in_dim, h1_p), lambda i: (0, 0)),        # weights: resident
            pl.BlockSpec((h1_p, h2_p), lambda i: (0, 0)),
            pl.BlockSpec((h2_p, out_dim), lambda i: (0, 0)),
            pl.BlockSpec((SUBLANE, bias_lanes), lambda i: (0, 0)),  # packed biases
        ],
        out_specs=pl.BlockSpec((tm, out_dim), lambda i: (i, 0)),
        compiler_params=pltpu.CompilerParams(
            dimension_semantics=("parallel",),
            vmem_limit_bytes=vmem_limit),
    )(xp, w1p, w2p, w3p, bp)

    return out_padded[:batch]


def reference_forward(x, w1, b1, w2, b2, w3, b3):
    h1 = jnp.maximum(x @ w1 + b1, 0.0)
    h2 = jnp.maximum(h1 @ w2 + b2, 0.0)
    return jax.nn.sigmoid(h2 @ w3 + b3)


def mlp_forward(x, raw_params, prepared_params, *, min_kernel_batch=256, **kw):
    """Dispatch: tiny batches go to fused XLA (kernel launch + padding would
    dominate); larger batches use the Pallas kernel."""
    if x.shape[0] < min_kernel_batch:
        return reference_forward(x, *raw_params)
    return mlp_forward_pallas(prepared_params, x, **kw)


def init_linear_params(key, in_features, out_features):
    """Deterministic init mimicking torch.nn.Linear default
    (U[-1/sqrt(fan_in), +1/sqrt(fan_in)]); weight already (in, out)."""
    k_w, k_b = jax.random.split(key)
    bound = 1.0 / math.sqrt(in_features)
    w = jax.random.uniform(k_w, (in_features, out_features), jnp.float32,
                           minval=-bound, maxval=bound)
    b = jax.random.uniform(k_b, (1, out_features), jnp.float32,
                           minval=-bound, maxval=bound)
    return w, b


if __name__ == "__main__":
    # Small shapes consistent with the module's forward: x is (batch, input_dim)
    batch = 8
    input_dim, hidden1_dim, hidden2_dim, output_dim = 32, 64, 32, 16

    key = jax.random.PRNGKey(0)
    k_x, k_x2, k1, k2, k3 = jax.random.split(key, 5)

    x = jax.random.normal(k_x, (batch, input_dim), jnp.float32)
    w1, b1 = init_linear_params(k1, input_dim, hidden1_dim)
    w2, b2 = init_linear_params(k2, hidden1_dim, hidden2_dim)
    w3, b3 = init_linear_params(k3, hidden2_dim, output_dim)
    raw = (w1, b1, w2, b2, w3, b3)

    ref = reference_forward(x, *raw)

    # f32 matmul path: tight check against the JAX reference.
    params_f32 = prepare_params(*raw, compute_dtype=jnp.float32)
    out_f32 = jax.block_until_ready(mlp_forward_pallas(params_f32, x))
    assert out_f32.shape == (batch, output_dim)
    assert jnp.allclose(out_f32, ref, atol=1e-5, rtol=1e-5), \
        "f32 kernel mismatch vs JAX reference"

    # bf16 matmul operands (default fast path on v6e/v7x; f32 accumulation
    # and f32 epilogue). Looser tolerance because of the bf16 operand cast.
    params_bf16 = prepare_params(*raw, compute_dtype=jnp.bfloat16)
    out_bf16 = jax.block_until_ready(mlp_forward_pallas(params_bf16, x))
    assert out_bf16.shape == (batch, output_dim)
    assert jnp.allclose(out_bf16, ref, atol=2e-2, rtol=2e-2), \
        "bf16 kernel mismatch vs JAX reference"

    # Multi-block grid + non-divisible batch: exercises tm selection, the
    # small batch-pad path, the partial last tile, and >=2 parallel blocks.
    big_batch = 300
    x_big = jax.random.normal(k_x2, (big_batch, input_dim), jnp.float32)
    ref_big = reference_forward(x_big, *raw)
    out_big = jax.block_until_ready(
        mlp_forward_pallas(params_f32, x_big, block_batch=128))
    assert out_big.shape == (big_batch, output_dim)
    assert jnp.allclose(out_big, ref_big, atol=1e-5, rtol=1e-5), \
        "multi-block kernel mismatch vs JAX reference"

    print("KERNEL_OK")
</pallas_src>

<mosaic_0001>
module attributes {stable_mosaic.version = 11 : i64} {
  func.func @mlp_kernel(%arg0: i32, %arg1: memref<8x32xf32, #tpu.memory_space<vmem>>, %arg2: memref<32x128xf32, #tpu.memory_space<vmem>>, %arg3: memref<128x128xf32, #tpu.memory_space<vmem>>, %arg4: memref<128x16xf32, #tpu.memory_space<vmem>>, %arg5: memref<8x128xf32, #tpu.memory_space<vmem>>, %arg6: memref<8x16xf32, #tpu.memory_space<vmem>>) attributes {dimension_semantics = [#tpu.dimension_semantics<parallel>], iteration_bounds = array<i64: 1>, scalar_prefetch = 0 : i64, scratch_operands = 0 : i64, tpu.core_type = #tpu.core_type<tc>, window_params = [{transform_indices = @transform_0, window_bounds = array<i64: 8, 32>}, {pipeline_mode = #tpu.pipeline_mode<synchronous>, transform_indices = @transform_1, window_bounds = array<i64: 32, 128>}, {pipeline_mode = #tpu.pipeline_mode<synchronous>, transform_indices = @transform_2, window_bounds = array<i64: 128, 128>}, {pipeline_mode = #tpu.pipeline_mode<synchronous>, transform_indices = @transform_3, window_bounds = array<i64: 128, 16>}, {pipeline_mode = #tpu.pipeline_mode<synchronous>, transform_indices = @transform_4, window_bounds = array<i64: 8, 128>}, {transform_indices = @transform_5, window_bounds = array<i64: 8, 16>}]} {
    %c0 = arith.constant 0 : index
    %c0_0 = arith.constant 0 : index
    %0 = vector.load %arg1[%c0, %c0_0] : memref<8x32xf32, #tpu.memory_space<vmem>>, vector<8x32xf32>
    %c0_1 = arith.constant 0 : index
    %c0_2 = arith.constant 0 : index
    %1 = vector.load %arg2[%c0_1, %c0_2] : memref<32x128xf32, #tpu.memory_space<vmem>>, vector<32x128xf32>
    %cst = arith.constant dense<0.000000e+00> : vector<8x128xf32>
    %2 = tpu.matmul %0, %1, %cst {dimension_numbers = #tpu.dot_dimension_numbers<[1], [0], [0], [1], [0, 0, 1, 1], [], []>} : vector<8x32xf32>, vector<32x128xf32>, vector<8x128xf32> -> vector<8x128xf32>
    %c0_3 = arith.constant 0 : index
    %c0_4 = arith.constant 0 : index
    %3 = vector.load %arg5[%c0_3, %c0_4] : memref<8x128xf32, #tpu.memory_space<vmem>>, vector<1x128xf32>
    %4 = vector.broadcast %3 : vector<1x128xf32> to vector<8x128xf32>
    %5 = arith.addf %2, %4 : vector<8x128xf32>
    %cst_5 = arith.constant 0.000000e+00 : f32
    %6 = vector.broadcast %cst_5 : f32 to vector<8x128xf32>
    %7 = arith.maximumf %5, %6 : vector<8x128xf32>
    %c0_6 = arith.constant 0 : index
    %c0_7 = arith.constant 0 : index
    %8 = vector.load %arg3[%c0_6, %c0_7] : memref<128x128xf32, #tpu.memory_space<vmem>>, vector<128x128xf32>
    %cst_8 = arith.constant dense<0.000000e+00> : vector<8x128xf32>
    %9 = tpu.matmul %7, %8, %cst_8 {dimension_numbers = #tpu.dot_dimension_numbers<[1], [0], [0], [1], [0, 0, 1, 1], [], []>} : vector<8x128xf32>, vector<128x128xf32>, vector<8x128xf32> -> vector<8x128xf32>
    %c1 = arith.constant 1 : index
    %c0_9 = arith.constant 0 : index
    %10 = vector.load %arg5[%c1, %c0_9] : memref<8x128xf32, #tpu.memory_space<vmem>>, vector<1x128xf32>
    %11 = vector.broadcast %10 : vector<1x128xf32> to vector<8x128xf32>
    %12 = arith.addf %9, %11 : vector<8x128xf32>
    %cst_10 = arith.constant 0.000000e+00 : f32
    %13 = vector.broadcast %cst_10 : f32 to vector<8x128xf32>
    %14 = arith.maximumf %12, %13 : vector<8x128xf32>
    %c0_11 = arith.constant 0 : index
    %c0_12 = arith.constant 0 : index
    %15 = vector.load %arg4[%c0_11, %c0_12] : memref<128x16xf32, #tpu.memory_space<vmem>>, vector<128x16xf32>
    %cst_13 = arith.constant dense<0.000000e+00> : vector<8x16xf32>
    %16 = tpu.matmul %14, %15, %cst_13 {dimension_numbers = #tpu.dot_dimension_numbers<[1], [0], [0], [1], [0, 0, 1, 1], [], []>} : vector<8x128xf32>, vector<128x16xf32>, vector<8x16xf32> -> vector<8x16xf32>
    %c2 = arith.constant 2 : index
    %c0_14 = arith.constant 0 : index
    %17 = vector.load %arg5[%c2, %c0_14] : memref<8x128xf32, #tpu.memory_space<vmem>>, vector<1x16xf32>
    %18 = vector.broadcast %17 : vector<1x16xf32> to vector<8x16xf32>
    %19 = arith.addf %16, %18 : vector<8x16xf32>
    %20 = arith.negf %19 : vector<8x16xf32>
    %21 = math.exp %20 : vector<8x16xf32>
    %cst_15 = arith.constant 1.000000e+00 : f32
    %22 = vector.broadcast %cst_15 : f32 to vector<8x16xf32>
    %23 = arith.addf %22, %21 : vector<8x16xf32>
    %24 = arith.divf %22, %23 : vector<8x16xf32>
    %c0_16 = arith.constant 0 : index
    %c0_17 = arith.constant 0 : index
    %25 = vector.load %arg6[%c0_16, %c0_17] : memref<8x16xf32, #tpu.memory_space<vmem>>, vector<8x16xf32>
    tpu.vector_store %arg6[%c0_16, %c0_17], %24 {strides = array<i32>} : memref<8x16xf32, #tpu.memory_space<vmem>>, vector<8x16xf32>,
    return
  }
  func.func @transform_0(%arg0: i32) -> (i32, i32) {
    %c0_i32 = arith.constant 0 : i32
    %c0_i32_0 = arith.constant 0 : i32
    return %arg0, %c0_i32 : i32, i32
  }
  func.func @transform_1(%arg0: i32) -> (i32, i32) {
    %c0_i32 = arith.constant 0 : i32
    %c0_i32_0 = arith.constant 0 : i32
    %c0_i32_1 = arith.constant 0 : i32
    return %c0_i32, %c0_i32_0 : i32, i32
  }
  func.func @transform_2(%arg0: i32) -> (i32, i32) {
    %c0_i32 = arith.constant 0 : i32
    %c0_i32_0 = arith.constant 0 : i32
    %c0_i32_1 = arith.constant 0 : i32
    return %c0_i32, %c0_i32_0 : i32, i32
  }
  func.func @transform_3(%arg0: i32) -> (i32, i32) {
    %c0_i32 = arith.constant 0 : i32
    %c0_i32_0 = arith.constant 0 : i32
    %c0_i32_1 = arith.constant 0 : i32
    return %c0_i32, %c0_i32_0 : i32, i32
  }
  func.func @transform_4(%arg0: i32) -> (i32, i32) {
    %c0_i32 = arith.constant 0 : i32
    %c0_i32_0 = arith.constant 0 : i32
    %c0_i32_1 = arith.constant 0 : i32
    return %c0_i32, %c0_i32_0 : i32, i32
  }
  func.func @transform_5(%arg0: i32) -> (i32, i32) {
    %c0_i32 = arith.constant 0 : i32
    %c0_i32_0 = arith.constant 0 : i32
    return %arg0, %c0_i32 : i32, i32
  }
}

</mosaic_0001>

<bundles_post_ra>
// kernel: tpu_custom_call.1
= control target key start
LH: loop header
LB: loop body
LE: loop exit
PB: predicated region body
PF: predicated region fallthrough
CT: control target
= control target key end

     0   :  { %10 = vsyncpa [#allocation3], 0  ;;  %s697_s0 = inlined_call_operand.vmem [shape: f32[8,32], index: 0, kind: input, shape index: {}]   ;;  %s698_s1 = inlined_call_operand.hbm [shape: f32[32,128], index: 1, kind: input, shape index: {}]   ;;  %s699_s2 = inlined_call_operand.vmem [shape: f32[128,128], index: 2, kind: input, shape index: {}]   ;;  %s700_s3 = inlined_call_operand.vmem [shape: f32[128,16], index: 3, kind: input, shape index: {}]   ;;  %s701_s4 = inlined_call_operand.vmem [shape: f32[8,128], index: 4, kind: input, shape index: {}]   ;;  %s702_s5 = inlined_call_operand.hbm [shape: f32[8,16], index: 5, kind: output, shape index: {}]  }
   0x1   :  { %11 = vsyncpa [#allocation4], 0  ;;  %s505_s18 = smov [#allocation2]  }
   0x2   :  { %s19_s19 = sshll.u32 %s505_s18, 4  ;;  %s20_s19 = int_to_ptr.vmem [resolvable:$true] %s19_s19 }
   0x3   :  { %s469_s20 = scalar_lea.vmem %s20_s19, 512  ;;  %p474_p1 = scmp.lt.s32.totalorder %s20_s19, %s20_s19 }
   0x4   :  { %p470_p0 = scmp.ne.s32.totalorder %s20_s19, %s469_s20  ;;  %p475_p2 = scmp.lt.s32.totalorder %s469_s20, %s469_s20 }
   0x6   :  { %p476_p3 = por %p475_p2, %p474_p1 }
   0x8   :  { %p477_p4 = pnand %p476_p3, %p470_p0 }
   0xa   :  { %480 = shalt.err (!%p477_p4)
}
   0xb   :  { %s506_s21 = smov 128   ;;  %s507_s22 = smov 8  }
   0xc   :  { %25 = dma.hbm_to_vmem [thread:$0]  %s698_s1, 512, %s20_s19, [#allocation3], %s506_s21, %s506_s21, %s507_s22  }
   0xd   :  { %501 = dma.done.wait [#allocation3], 512  }
   0xe   :  { %502 = vsyncadd [#allocation3], 4294966784  ;;  %v508_v0 = vmov 0.0   ;;  %vm509_vm0 = vmmov 0   ;;  %v39_v1 = vld [vmem:[#allocation2 + $0x18] sm:$0xff]  ;;  %v38_v2 = vld [vmem:[#allocation2 + $0x10] sm:$0xff] }
   0xf   :  { %370 = vmatprep.subr.mxu0 %v508_v0  ;;  %378 = vmatprep.mubr.msk.f32.mxu0 %vm509_vm0, %v508_v0  ;;  %v135_v3 = vld [vmem:[%s699_s2 + $0x78] sm:$0xff]  ;;  %v37_v4 = vld [vmem:[#allocation2 + $0x8] sm:$0xff]  ;;  %v134_v5 = vld [vmem:[%s699_s2 + $0x70] sm:$0xff]  ;;  %vm45_vm1 = vcmask 261120   ;;  %vm309_vm2 = vcmask 130048  }
  0x10   :  { %381 = vmatprep.subr.mxu1 %v508_v0  ;;  %413 = vmatprep.mubr.msk.f32.mxu1 %vm509_vm0, %v508_v0  ;;  %v133_v6 = vld [vmem:[%s699_s2 + $0x68] sm:$0xff]  ;;  %v36_v7 = vld [vmem:[#allocation2] sm:$0xff]  ;;  %v131_v10 = vld [vmem:[%s699_s2 + $0x58] sm:$0xff] }
  0x11   :  { %371 = vmatpush3.msra.mxu0 %v39_v1  ;;  %382 = vmatpush3.msra.mxu1 %v135_v3  ;;  %v35_v8 = vld [vmem:[%s697_s0] sm:$0xff]  ;;  %v130_v11 = vld [vmem:[%s699_s2 + $0x50] sm:$0xff]  ;;  %v129_v12 = vld [vmem:[%s699_s2 + $0x48] sm:$0xff] }
  0x12   :  { %372 = vmatprep.subr.mxu0 %v508_v0  ;;  %383 = vmatprep.subr.mxu1 %v508_v0  ;;  %v132_v9 = vld [vmem:[%s699_s2 + $0x60] sm:$0xff]  ;;  %v127_v14 = vld [vmem:[%s699_s2 + $0x38] sm:$0xff]  ;;  %v126_v15 = vld [vmem:[%s699_s2 + $0x30] sm:$0xff] }
  0x13   :  { %373 = vmatpush3.msra.mxu0 %v38_v2  ;;  %384 = vmatpush3.msra.mxu1 %v134_v5  ;;  %v128_v13 = vld [vmem:[%s699_s2 + $0x40] sm:$0xff]  ;;  %v125_v16 = vld [vmem:[%s699_s2 + $0x28] sm:$0xff]  ;;  %v123_v18 = vld [vmem:[%s699_s2 + $0x18] sm:$0xff] }
  0x14   :  { %374 = vmatprep.subr.mxu0 %v508_v0  ;;  %385 = vmatprep.subr.mxu1 %v508_v0  ;;  %v124_v17 = vld [vmem:[%s699_s2 + $0x20] sm:$0xff]  ;;  %v122_v19 = vld [vmem:[%s699_s2 + $0x10] sm:$0xff]  ;;  %v121_v20 = vld [vmem:[%s699_s2 + $0x8] sm:$0xff] }
  0x15   :  { %375 = vmatpush3.msra.mxu0 %v37_v4  ;;  %386 = vmatpush3.msra.mxu1 %v133_v6  ;;  %v120_v21 = vld [vmem:[%s699_s2] sm:$0xff]  ;;  %v227_v22 = vld [vmem:[%s700_s3 + $0x78] sm:$0xff]  ;;  %v226_v23 = vld [vmem:[%s700_s3 + $0x70] sm:$0xff] }
  0x16   :  { %376 = vmatprep.subr.mxu0 %v508_v0  ;;  %387 = vmatprep.subr.mxu1 %v508_v0  ;;  %v225_v24 = vld [vmem:[%s700_s3 + $0x68] sm:$0xff]  ;;  %v224_v25 = vld [vmem:[%s700_s3 + $0x60] sm:$0xff]  ;;  %v223_v26 = vld [vmem:[%s700_s3 + $0x58] sm:$0xff] }
  0x17   :  { %377 = vmatpush3.msra.mxu0 %v36_v7  ;;  %388 = vmatpush3.msra.mxu1 %v132_v9  ;;  %v222_v27 = vld [vmem:[%s700_s3 + $0x50] sm:$0xff]  ;;  %v221_v28 = vld [vmem:[%s700_s3 + $0x48] sm:$0xff]  ;;  %v220_v29 = vld [vmem:[%s700_s3 + $0x40] sm:$0xff] }
  0x18   :  { %379 = vmatmul.mubr.msk.f32.vlgmr.msra.gmra.mxu0 %vm45_vm1, %v35_v8  ;;  %389 = vmatprep.subr.mxu1 %v508_v0  ;;  %v219_v30 = vld [vmem:[%s700_s3 + $0x38] sm:$0xff]  ;;  %v218_v31 = vld [vmem:[%s700_s3 + $0x30] sm:$0xff]  ;;  %v217_v32 = vld [vmem:[%s700_s3 + $0x28] sm:$0xff] }
  0x19   :  { %416 = vmatprep.subr.mxu0 %v508_v0  ;;  %390 = vmatpush3.msra.mxu1 %v131_v10  ;;  %v216_v33 = vld [vmem:[%s700_s3 + $0x20] sm:$0xff]  ;;  %v215_v34 = vld [vmem:[%s700_s3 + $0x18] sm:$0xff]  ;;  %v214_v40 = vld [vmem:[%s700_s3 + $0x10] sm:$0xff] }
  0x1a   :  { %448 = vmatprep.mubr.msk.f32.mxu0 %vm509_vm0, %v508_v0  ;;  %391 = vmatprep.subr.mxu1 %v508_v0  ;;  %v326_v35 = vld [vmem:[%s701_s4] ss:$0 sm:$0xff]  ;;  %v213_v41 = vld [vmem:[%s700_s3 + $0x8] sm:$0xff]  ;;  %v328_v43 = vld [vmem:[%s701_s4 + $0x1] ss:$0 sm:$0xff] }
  0x1b   :  { %392 = vmatpush3.msra.mxu1 %v130_v11  ;;  %417 = vmatpush3.msra.mxu0 %v227_v22  ;;  %v212_v42 = vld [vmem:[%s700_s3] sm:$0xff]  ;;  %s510_s3 = smov [#allocation5]  }
  0x1c   :  { %393 = vmatprep.subr.mxu1 %v508_v0  ;;  %418 = vmatprep.subr.mxu0 %v508_v0  ;;  %v329_v48 = vld [vmem:[%s701_s4 + $0x2] ss:$0 sm:$0xff]  ;;  %s317_s14 = sshll.u32 %s510_s3, 4  ;;  %s318_s14 = int_to_ptr.vmem [resolvable:$true] %s317_s14 }
  0x1d   :  { %394 = vmatpush3.msra.mxu1 %v129_v12  ;;  %419 = vmatpush3.msra.mxu0 %v226_v23  ;;  %s481_s15 = scalar_lea.vmem %s318_s14, 128  ;;  %p486_p6 = scmp.lt.s32.totalorder %s318_s14, %s318_s14 }
  0x1e   :  { %395 = vmatprep.subr.mxu1 %v508_v0  ;;  %420 = vmatprep.subr.mxu0 %v508_v0  ;;  %p482_p5 = scmp.ne.s32.totalorder %s318_s14, %s481_s15  ;;  %p487_p7 = scmp.lt.s32.totalorder %s481_s15, %s481_s15 }
  0x1f   :  { %396 = vmatpush3.msra.mxu1 %v128_v13  ;;  %421 = vmatpush3.msra.mxu0 %v225_v24 }
  0x20   :  { %397 = vmatprep.subr.mxu1 %v508_v0  ;;  %422 = vmatprep.subr.mxu0 %v508_v0  ;;  %p488_p8 = por %p487_p7, %p486_p6 }
  0x21   :  { %398 = vmatpush3.msra.mxu1 %v127_v14  ;;  %423 = vmatpush3.msra.mxu0 %v224_v25 }
  0x22   :  { %399 = vmatprep.subr.mxu1 %v508_v0  ;;  %424 = vmatprep.subr.mxu0 %v508_v0  ;;  %p489_p9 = pnand %p488_p8, %p482_p5 }
  0x23   :  { %400 = vmatpush3.msra.mxu1 %v126_v15  ;;  %425 = vmatpush3.msra.mxu0 %v223_v26 }
  0x24   :  { %401 = vmatprep.subr.mxu1 %v508_v0  ;;  %426 = vmatprep.subr.mxu0 %v508_v0 }
  0x25   :  { %402 = vmatpush3.msra.mxu1 %v125_v16  ;;  %427 = vmatpush3.msra.mxu0 %v222_v27 }
  0x26   :  { %403 = vmatprep.subr.mxu1 %v508_v0  ;;  %428 = vmatprep.subr.mxu0 %v508_v0 }
  0x27   :  { %404 = vmatpush3.msra.mxu1 %v124_v17  ;;  %429 = vmatpush3.msra.mxu0 %v221_v28 }
  0x28   :  { %405 = vmatprep.subr.mxu1 %v508_v0  ;;  %430 = vmatprep.subr.mxu0 %v508_v0 }
  0x29   :  { %406 = vmatpush3.msra.mxu1 %v123_v18  ;;  %431 = vmatpush3.msra.mxu0 %v220_v29 }
  0x2a   :  { %407 = vmatprep.subr.mxu1 %v508_v0  ;;  %432 = vmatprep.subr.mxu0 %v508_v0 }
  0x2b   :  { %408 = vmatpush3.msra.mxu1 %v122_v19  ;;  %433 = vmatpush3.msra.mxu0 %v219_v30 }
  0x2c   :  { %409 = vmatprep.subr.mxu1 %v508_v0  ;;  %434 = vmatprep.subr.mxu0 %v508_v0 }
  0x2d   :  { %410 = vmatpush3.msra.mxu1 %v121_v20  ;;  %435 = vmatpush3.msra.mxu0 %v218_v31 }
  0x2e   :  { %411 = vmatprep.subr.mxu1 %v508_v0  ;;  %436 = vmatprep.subr.mxu0 %v508_v0 }
  0x2f   :  { %412 = vmatpush3.msra.mxu1 %v120_v21  ;;  %437 = vmatpush3.msra.mxu0 %v217_v32 }
  0x30   :  { %438 = vmatprep.subr.mxu0 %v508_v0 }
  0x31   :  { %439 = vmatpush3.msra.mxu0 %v216_v33 }
  0x32   :  { %440 = vmatprep.subr.mxu0 %v508_v0 }
  0x33   :  { %441 = vmatpush3.msra.mxu0 %v215_v34 }
  0x34   :  { %442 = vmatprep.subr.mxu0 %v508_v0 }
  0x35   :  { %443 = vmatpush3.msra.mxu0 %v214_v40 }
  0x36   :  { %444 = vmatprep.subr.mxu0 %v508_v0 }
  0x37   :  { %445 = vmatpush3.msra.mxu0 %v213_v41 }
  0x38   :  { %446 = vmatprep.subr.mxu0 %v508_v0 }
  0x39   :  { %447 = vmatpush3.msra.mxu0 %v212_v42 }
  0xd8   :  { %v115_v36 = vpop.f32.mrf.mxu0 }
  0xd9   :  { %v116_v37 = vadd.f32 %v326_v35, %v115_v36 }
  0xda   :  { %v380_v38 = vpop.f32.mrf.mxu0 }
  0xdb   :  { %v119_v39 = vmax.f32 %v116_v37, 0.0 }
  0xdd   :  { %414 = vmatmul.mubr.f32.vlgmr.msra.gmra.mxu1 %v119_v39 }
 0x19d   :  { %v207_v44 = vpop.f32.mrf.mxu1 }
 0x19e   :  { %v208_v45 = vadd.f32 %v328_v43, %v207_v44 }
 0x19f   :  { %v415_v46 = vpop.f32.mrf.mxu1 }
 0x1a0   :  { %v211_v47 = vmax.f32 %v208_v45, 0.0 }
 0x1a2   :  { %449 = vmatmul.mubr.f32.vlgmr.msra.gmra.mxu0 %v211_v47 }
 0x262   :  { %v299_v49 = vpop.f32.mrf.mxu0 }
 0x263   :  { %v300_v50 = vadd.f32 %v329_v48, %v299_v49 }
 0x264   :  { %v450_v51 = vpop.f32.mrf.mxu0 }
 0x265   :  { %v330_v52 = vmul.f32 -1.442695, %v300_v50 }
 0x267   :  { %457 = vpow2.f32 %v330_v52 }
 0x274   :  { %v458_v53 = vpop.eup %457 }
 0x275   :  { %v306_v54 = vadd.f32 1.0, %v458_v53 }
 0x277   :  { %459 = vrcp.f32 %v306_v54 }
 0x284   :  { %v460_v55 = vpop.eup %459 }
 0x285   :  { %310 = vst.msk [vmem:[#allocation5] sm:$0xff] %vm309_vm2, %v460_v55 }
 0x286   :  { %492 = shalt.err (!%p489_p9)
}
 0x287   :  { %320 = dma.vmem_to_hbm [thread:$0]  %s318_s14, 128, %s702_s5, [#allocation4]  }
 0x288   :  { %503 = dma.done.wait [#allocation4], 128  }
 0x289   :  { %504 = vsyncadd [#allocation4], 4294967168 }
 0x28a   :  { %324 = vsyncpa [#allocation3], 1 }
 0x28b   :  { %325 = vsyncpa [#allocation4], 1 }

</bundles_post_ra>
